<compile_context>
chip_gen: v7x
topology: tpu7x:2x2x1
jax: 0.10.0
libtpu: 0.0.40
codegen_flags: <defaults>
</compile_context>

<pallas_src>
import functools
import math

import jax
import jax.numpy as jnp
from jax.experimental import pallas as pl
from jax.experimental.pallas import tpu as pltpu

_TWO_PI = 2.0 * math.pi
_HIGH = jax.lax.Precision.HIGHEST  # tiny-K matmul: accuracy is free, EUP is the bottleneck

# Above this batch size the narrow-output transposed layout is not worth the extra
# wrapper-side transpose pass over the output (full HBM read+write).
_LANE_PATH_MAX_BATCH = 4096


# ----------------------------- kernels ---------------------------------------


def _fourier_rows_kernel(x_ref, wt_ref, o_ref, *, aligned_halves):
    # x_ref: [TB, d_in]   wt_ref: [d_in, half]   o_ref: [TB, 2*half]
    half = wt_ref.shape[1]
    f = _TWO_PI * jnp.dot(x_ref[...], wt_ref[...],
                          preferred_element_type=jnp.float32, precision=_HIGH)
    c = jnp.cos(f).astype(o_ref.dtype)
    s = jnp.sin(f).astype(o_ref.dtype)
    if aligned_halves:
        # half % 128 == 0: both slab stores start on a lane-aligned offset (full vst).
        o_ref[:, :half] = c
        o_ref[:, half:] = s
    else:
        # Build the concatenation in-register (XLU) and issue one full-tile store.
        o_ref[...] = jnp.concatenate([c, s], axis=-1)


def _fourier_lanes_kernel(xt_ref, w_ref, ot_ref, *, aligned_halves):
    # Lane-dense variant for narrow outputs: lanes carry the batch.
    # xt_ref: [d_in, TB]   w_ref: [half, d_in]   ot_ref: [2*half, TB]
    half = w_ref.shape[0]
    f = _TWO_PI * jnp.dot(w_ref[...], xt_ref[...],
                          preferred_element_type=jnp.float32, precision=_HIGH)
    c = jnp.cos(f).astype(ot_ref.dtype)
    s = jnp.sin(f).astype(ot_ref.dtype)
    if aligned_halves:
        # Sublane-aligned slab stores (half is a multiple of the sublane pack).
        ot_ref[:half, :] = c
        ot_ref[half:, :] = s
    else:
        ot_ref[...] = jnp.concatenate([c, s], axis=0)


# ----------------------------- tiling policy ----------------------------------


def _round_up(x, m):
    return (x + m - 1) // m * m


def _tpu_vmem_caps():
    """(per-tile VMEM budget, scoped vmem_limit_bytes), generation-aware."""
    try:
        cap = pltpu.get_tpu_info().vmem_capacity_bytes
    except Exception:  # no hw info available -> stay conservative (v7x-safe)
        cap = 0
    if cap >= (96 << 20):          # v5e / v6e: 128 MiB physical VMEM
        return 24 << 20, 64 << 20
    return 8 << 20, 32 << 20       # v7x (64 MiB) or unknown


def _choose_batch_tile(B, per_item_bytes, align, budget_bytes, *,
                       min_items=256, target_steps=4):
    """Batch-tile size: multiple of `align`, >= ~min_items per step, aiming for
    >= target_steps grid steps (megacore sharding + pipelining), VMEM-budgeted.
    Returns B itself (single full block) when a tile would cover the whole batch."""
    if B <= align:
        return B  # single block equal to the full dim (always layout-legal)
    vmem_cap = max(budget_bytes // max(per_item_bytes, 1), align)
    vmem_cap = (vmem_cap // align) * align
    target = _round_up(-(-B // target_steps), align)       # ~4 steps
    tb = max(target, _round_up(min_items, align))           # amortize per-step overhead
    tb = min(tb, vmem_cap)
    tb = max(tb, align)
    if tb >= B:
        return B
    return tb


# ----------------------------- wrapper ----------------------------------------


def fourier_features(x, weight):
    """x: [B, in_features], weight: [out_features//2, in_features] -> [B, out_features]."""
    B, d_in = x.shape
    half, d_in_w = weight.shape
    assert d_in == d_in_w
    out_features = 2 * half
    out_dtype = x.dtype
    in_isz = jnp.dtype(x.dtype).itemsize
    out_isz = jnp.dtype(out_dtype).itemsize
    w_isz = jnp.dtype(weight.dtype).itemsize

    tile_budget, vmem_limit = _tpu_vmem_caps()
    # Resident (grid-constant) weight tile comes out of the budget first.
    tile_budget = max(tile_budget - 2 * half * d_in * w_isz, 1 << 20)
    # Per batch-element VMEM: double-buffered x + out tiles, plus the in-kernel f32
    # temporaries (f, cos, sin and a possible in-register concatenation).
    per_item = (2 * d_in * in_isz
                + 2 * out_features * out_isz
                + (3 * half + out_features) * 4)

    compiler_params = pltpu.CompilerParams(
        dimension_semantics=("parallel",),   # shard batch tiles across TCs (v7x)
        vmem_limit_bytes=vmem_limit,
    )

    use_lane_path = (out_features < 128) and (B <= _LANE_PATH_MAX_BATCH)

    if not use_lane_path:
        # Row-major path: batch on sublanes, features on lanes.
        sub_pack = max(1, 4 // max(in_isz, 1))     # f32:1, bf16:2, int8/fp8:4
        align = 8 * sub_pack
        tb = _choose_batch_tile(B, per_item, align, tile_budget)
        grid = pl.cdiv(B, tb)                      # ragged last block handled by Pallas
        kernel = functools.partial(_fourier_rows_kernel,
                                   aligned_halves=(half % 128 == 0))
        w_t = weight.T                             # one-time layout change, outside loop
        return pl.pallas_call(
            kernel,
            out_shape=jax.ShapeDtypeStruct((B, out_features), out_dtype),
            grid_spec=pl.GridSpec(
                grid=(grid,),
                in_specs=[
                    pl.BlockSpec((tb, d_in), lambda i: (i, 0)),
                    pl.BlockSpec((d_in, half), lambda i: (0, 0)),   # resident weight
                ],
                out_specs=pl.BlockSpec((tb, out_features), lambda i: (i, 0)),
            ),
            compiler_params=compiler_params,
        )(x, w_t)

    # Narrow output (< 128 features), modest batch: lane-dense transposed layout,
    # lanes carry the batch so stores are full-width vst instead of masked vst.msk.
    align = 128
    tb = _choose_batch_tile(B, per_item, align, tile_budget)
    grid = pl.cdiv(B, tb)
    out_sub_pack = max(1, 4 // max(out_isz, 1))
    kernel = functools.partial(_fourier_lanes_kernel,
                               aligned_halves=(half % (8 * out_sub_pack) == 0))
    xt = x.T   # cheap for the small B this path is gated on
    out_t = pl.pallas_call(
        kernel,
        out_shape=jax.ShapeDtypeStruct((out_features, B), out_dtype),
        grid_spec=pl.GridSpec(
            grid=(grid,),
            in_specs=[
                pl.BlockSpec((d_in, tb), lambda i: (0, i)),
                pl.BlockSpec((half, d_in), lambda i: (0, 0)),       # resident weight
            ],
            out_specs=pl.BlockSpec((out_features, tb), lambda i: (0, i)),
        ),
        compiler_params=compiler_params,
    )(xt, weight)
    return out_t.T


def fourier_features_ref(x, weight):
    f = _TWO_PI * jnp.dot(x, weight.T, precision=_HIGH)
    return jnp.concatenate([jnp.cos(f), jnp.sin(f)], axis=-1)


if __name__ == "__main__":
    key = jax.random.PRNGKey(0)
    k1, k2, k3, k4, k5, k6, k7, k8 = jax.random.split(key, 8)

    # Config 1: timestep-embedding sizes (narrow output, tiny batch -> lane-dense path).
    w1 = jax.random.normal(k1, (32 // 2, 4), jnp.float32)
    x1 = jax.random.normal(k2, (8, 4), jnp.float32)
    o1 = jax.block_until_ready(fourier_features(x1, w1))
    r1 = fourier_features_ref(x1, w1)
    assert o1.shape == (8, 32)
    assert jnp.allclose(o1, r1, atol=1e-3, rtol=1e-3), "mismatch (lane path, tiny B)"

    # Config 2: wide aligned output + ragged batch -> row path, aligned slab stores,
    # cdiv grid with a ragged last block (no pad-to-tile-multiple).
    w2 = jax.random.normal(k3, (256 // 2, 8), jnp.float32)
    x2 = jax.random.normal(k4, (300, 8), jnp.float32)
    o2 = jax.block_until_ready(fourier_features(x2, w2))
    r2 = fourier_features_ref(x2, w2)
    assert o2.shape == (300, 256)
    assert jnp.allclose(o2, r2, atol=1e-3, rtol=1e-3), "mismatch (row path, ragged B)"

    # Config 3: out=128 (half=64, not lane-aligned) -> row path, single concatenated
    # full-width store instead of a misaligned second slab.
    w3 = jax.random.normal(k5, (128 // 2, 4), jnp.float32)
    x3 = jax.random.normal(k6, (48, 4), jnp.float32)
    o3 = jax.block_until_ready(fourier_features(x3, w3))
    r3 = fourier_features_ref(x3, w3)
    assert o3.shape == (48, 128)
    assert jnp.allclose(o3, r3, atol=1e-3, rtol=1e-3), "mismatch (row path, concat store)"

    # Config 4: narrow output with a larger ragged batch -> lane path, cdiv grid + edge.
    w4 = jax.random.normal(k7, (16 // 2, 2), jnp.float32)
    x4 = jax.random.normal(k8, (300, 2), jnp.float32)
    o4 = jax.block_until_ready(fourier_features(x4, w4))
    r4 = fourier_features_ref(x4, w4)
    assert o4.shape == (300, 16)
    assert jnp.allclose(o4, r4, atol=1e-3, rtol=1e-3), "mismatch (lane path, ragged B)"

    print("KERNEL_OK")
</pallas_src>

<mosaic_0001>
module attributes {stable_mosaic.version = 11 : i64} {
  func.func @_fourier_lanes_kernel(%arg0: i32, %arg1: memref<4x8xf32, #tpu.memory_space<vmem>>, %arg2: memref<16x4xf32, #tpu.memory_space<vmem>>, %arg3: memref<32x8xf32, #tpu.memory_space<vmem>>) attributes {dimension_semantics = [#tpu.dimension_semantics<parallel>], iteration_bounds = array<i64: 1>, scalar_prefetch = 0 : i64, scratch_operands = 0 : i64, tpu.core_type = #tpu.core_type<tc>, window_params = [{transform_indices = @transform_0, window_bounds = array<i64: 4, 8>}, {pipeline_mode = #tpu.pipeline_mode<synchronous>, transform_indices = @transform_1, window_bounds = array<i64: 16, 4>}, {transform_indices = @transform_2, window_bounds = array<i64: 32, 8>}]} {
    %c0 = arith.constant 0 : index
    %c0_0 = arith.constant 0 : index
    %0 = vector.load %arg2[%c0, %c0_0] : memref<16x4xf32, #tpu.memory_space<vmem>>, vector<16x4xf32>
    %c0_1 = arith.constant 0 : index
    %c0_2 = arith.constant 0 : index
    %1 = vector.load %arg1[%c0_1, %c0_2] : memref<4x8xf32, #tpu.memory_space<vmem>>, vector<4x8xf32>
    %cst = arith.constant dense<0.000000e+00> : vector<16x8xf32>
    %2 = tpu.matmul %0, %1, %cst {dimension_numbers = #tpu.dot_dimension_numbers<[1], [0], [0], [1], [0, 0, 1, 1], [], []>, precision = #tpu.contract_precision<fp32>} : vector<16x4xf32>, vector<4x8xf32>, vector<16x8xf32> -> vector<16x8xf32>
    %cst_3 = arith.constant 6.28318548 : f32
    %3 = vector.broadcast %cst_3 : f32 to vector<16x8xf32>
    %4 = arith.mulf %3, %2 : vector<16x8xf32>
    %5 = math.cos %4 : vector<16x8xf32>
    %6 = math.sin %4 : vector<16x8xf32>
    %c0_4 = arith.constant 0 : index
    %c0_5 = arith.constant 0 : index
    %7 = vector.load %arg3[%c0_4, %c0_5] : memref<32x8xf32, #tpu.memory_space<vmem>>, vector<16x8xf32>
    tpu.vector_store %arg3[%c0_4, %c0_5], %5 {strides = array<i32>} : memref<32x8xf32, #tpu.memory_space<vmem>>, vector<16x8xf32>,
    %c16 = arith.constant 16 : index
    %c0_6 = arith.constant 0 : index
    %8 = vector.load %arg3[%c16, %c0_6] : memref<32x8xf32, #tpu.memory_space<vmem>>, vector<16x8xf32>
    tpu.vector_store %arg3[%c16, %c0_6], %6 {strides = array<i32>} : memref<32x8xf32, #tpu.memory_space<vmem>>, vector<16x8xf32>,
    return
  }
  func.func @transform_0(%arg0: i32) -> (i32, i32) {
    %c0_i32 = arith.constant 0 : i32
    %c0_i32_0 = arith.constant 0 : i32
    return %c0_i32, %arg0 : i32, i32
  }
  func.func @transform_1(%arg0: i32) -> (i32, i32) {
    %c0_i32 = arith.constant 0 : i32
    %c0_i32_0 = arith.constant 0 : i32
    %c0_i32_1 = arith.constant 0 : i32
    return %c0_i32, %c0_i32_0 : i32, i32
  }
  func.func @transform_2(%arg0: i32) -> (i32, i32) {
    %c0_i32 = arith.constant 0 : i32
    %c0_i32_0 = arith.constant 0 : i32
    return %c0_i32, %arg0 : i32, i32
  }
}

</mosaic_0001>

<bundles_post_ra>
// kernel: tpu_custom_call.1
= control target key start
LH: loop header
LB: loop body
LE: loop exit
PB: predicated region body
PF: predicated region fallthrough
CT: control target
= control target key end

     0   :  { %vm21_vm0 = vcmask 1043456   ;;  %vm14_vm1 = vcmask 31744   ;;  %v1035_v49 = vmov 683565275   ;;  %v1036_v53 = vmov 2475754826   ;;  %s1143_s0 = inlined_call_operand.vmem [shape: f32[4,8], index: 0, kind: input, shape index: {}]   ;;  %s1144_s1 = inlined_call_operand.vmem [shape: f32[16,4], index: 1, kind: input, shape index: {}]   ;;  %s1145_s2 = inlined_call_operand.vmem [shape: f32[32,8], index: 2, kind: output, shape index: {}]  }
   0x1   :  { %v13_v0 = vld [vmem:[%s1143_s0] sm:$0xf]  ;;  %v12_v2 = vld [vmem:[%s1144_s1 + $0x8] sm:$0xff]  ;;  %v1037_v55 = vmov 2131351028  }
   0x2   :  { %v11_v1 = vld [vmem:[%s1144_s1] sm:$0xff]  ;;  %v23_v3 = vsel %vm21_vm0, %v13_v0, 0  ;;  %v19_v5 = vsel %vm14_vm1, %v12_v2, 0  ;;  %v1038_v57 = vmov 2102212464  }
   0x3   :  { %v16_v4 = vsel %vm14_vm1, %v11_v1, 0  ;;  %v26_v6 = vand.u32 4294901760, %v23_v3  ;;  %v101_v8 = vand.u32 4294901760, %v19_v5  ;;  %v1039_v59 = vmov 920167782  }
   0x4   :  { %v91_v7 = vand.u32 4294901760, %v16_v4  ;;  %v1040_v2 = vmov 1326507024  }
   0x5   :  { %988 = vmatprep.subr.mxu0 %v26_v6  ;;  %v102_v10 = vsub.f32 %v19_v5, %v101_v8  ;;  %973 = vmatprep.subr.mxu1 %v26_v6  ;;  %v113_v11 = vsub.f32 %v23_v3, %v26_v6 }
   0x6   :  { %v92_v9 = vsub.f32 %v16_v4, %v91_v7  ;;  %989 = vmatpush3.msra.mxu0 %v26_v6  ;;  %974 = vmatpush3.msra.mxu1 %v26_v6 }
   0x7   :  { %v103_v13 = vand.u32 4294901760, %v102_v10  ;;  %v114_v14 = vand.u32 4294901760, %v113_v11 }
   0x8   :  { %v93_v12 = vand.u32 4294901760, %v92_v9 }
   0x9   :  { %v115_v16 = vsub.f32 %v113_v11, %v114_v14  ;;  %993 = vmatprep.subr.mxu0 %v114_v14  ;;  %v104_v17 = vsub.f32 %v102_v10, %v103_v13 }
   0xa   :  { %990 = vmatprep.mubr.f32.mxu0 %v93_v12  ;;  %v94_v15 = vsub.f32 %v92_v9, %v93_v12 }
   0xb   :  { %991 = vmatmul.mubr.f32.vlgmr.msra.gmra.mrb[0].mxu0 %v103_v13  ;;  %v116_v19 = vand.u32 4294901760, %v115_v16  ;;  %v105_v20 = vand.u32 4294901760, %v104_v17 }
   0xc   :  { %v95_v18 = vand.u32 4294901760, %v94_v15  ;;  %994 = vmatpush3.msra.mxu0 %v114_v14  ;;  %995 = vmatprep.mubr.f32.mxu0 %v91_v7 }
   0xd   :  { %998 = vmatprep.subr.mxu0 %v26_v6  ;;  %978 = vmatprep.subr.mxu1 %v116_v19 }
   0xe   :  { %975 = vmatprep.mubr.f32.mxu1 %v95_v18 }
   0xf   :  { %976 = vmatmul.mubr.f32.vlgmr.msra.gmra.mrb[0].mxu1 %v105_v20 }
  0x10   :  { %979 = vmatpush3.msra.mxu1 %v116_v19  ;;  %980 = vmatprep.mubr.f32.mxu1 %v91_v7 }
  0x11   :  { %983 = vmatprep.subr.mxu1 %v113_v11 }
  0x13   :  { %996 = vmatmul.mubr.f32.vlgmr.msra.gmra.mrb[0].mxu0 %v101_v8 }
  0x14   :  { %999 = vmatpush3.msra.mxu0 %v26_v6  ;;  %1000 = vmatprep.mubr.f32.mxu0 %v91_v7 }
  0x17   :  { %981 = vmatmul.mubr.f32.vlgmr.msra.gmra.mrb[0].mxu1 %v101_v8 }
  0x18   :  { %984 = vmatpush3.msra.mxu1 %v113_v11  ;;  %985 = vmatprep.mubr.f32.mxu1 %v92_v9 }
  0x1b   :  { %1001 = vmatmul.mubr.f32.vlgmr.msra.gmra.mrb[0].mxu0 %v101_v8 }
  0x1f   :  { %986 = vmatmul.mubr.f32.vlgmr.msra.gmra.mrb[0].mxu1 %v102_v10 }
  0xee   :  { %v1002_v21 = vpop.f32.mrb[0].mxu0 }
  0xef   :  { %v504_v22 = vpop.f32.mrb[1].mxu0 }
  0xf2   :  { %v987_v23 = vpop.f32.mrb[0].mxu1 }
  0xf3   :  { %v1003_v24 = vadd.f32 %v1002_v21, %v987_v23  ;;  %v263_v25 = vpop.f32.mrb[1].mxu1 }
  0xf4   :  { %v1004_v26 = vadd.f32 %v504_v22, %v263_v25 }
  0xf5   :  { %v1065_v27 = vmul.f32 6.2831855, %v1003_v24 }
  0xf6   :  { %v1067_v28 = vmul.f32 6.2831855, %v1004_v26 }
  0xf7   :  { %v619_v29 = vand.u32 2147483647, %v1065_v27  ;;  %v622_v30 = vand.u32 2139095040, %v1065_v27  ;;  %vm621_vm0 = vcmp.lt.s32.totalorder %v1065_v27, 0 }
  0xf8   :  { %v519_v31 = vand.u32 2139095040, %v1067_v28  ;;  %v516_v34 = vand.u32 2147483647, %v1067_v28 }
  0xf9   :  { %v623_v32 = vshrl.u32 %v622_v30, 23  ;;  %v626_v33 = vand.u32 8388607, %v619_v29  ;;  %vm620_vm1 = vcmp.le.f32.partialorder %v619_v29, 0.7853982 }
  0xfa   :  { %v520_v35 = vshrl.u32 %v519_v31, 23  ;;  %v1077_v40 = vand.u32 8388607, %v516_v34 }
  0xfb   :  { %v943_v36 = vadd.s32 4294967169, %v623_v32  ;;  %v627_v39 = vor.u32 8388608, %v626_v33 }
  0xfc   :  { %v939_v37 = vadd.s32 4294967169, %v520_v35  ;;  %v524_v47 = vor.u32 8388608, %v1077_v40 }
  0xfd   :  { %v629_v38 = vadd.s32 1, %v943_v36  ;;  %v1079_v46 = vshll.u32 %v627_v39, 8 }
  0xfe   :  { %v526_v41 = vadd.s32 1, %v939_v37 }
  0xff   :  { %vm630_vm2 = vcmp.gt.s32.totalorder %v629_v38, 0 }
 0x100   :  { %v631_v42 = vsel %vm630_vm2, %v629_v38, 0  ;;  %vm527_vm3 = vcmp.gt.s32.totalorder %v526_v41, 0  ;;  %vm518_vm2 = vcmp.lt.s32.totalorder %v1067_v28, 0 }
 0x101   :  { %v632_v43 = vshrl.u32 %v631_v42, 5  ;;  %v633_v44 = vand.u32 31, %v631_v42  ;;  %v528_v45 = vsel %vm527_vm3, %v526_v41, 0  ;;  %v564_v41 = vshll.u32 %v524_v47, 8 }
 0x102   :  { %v1082_v51 = vshrl.u32 %v528_v45, 5  ;;  %v530_v52 = vand.u32 31, %v528_v45  ;;  %vm517_vm3 = vcmp.le.f32.partialorder %v516_v34, 0.7853982 }
 0x103   :  { %v634_v48 = vsub.s32 32, %v633_v44  ;;  %v636_v50 = vshll.u32 %v1035_v49, %v633_v44  ;;  %v639_v54 = vshll.u32 %v1036_v53, %v633_v44  ;;  %v642_v56 = vshll.u32 %v1037_v55, %v633_v44 }
 0x104   :  { %v645_v58 = vshll.u32 %v1038_v57, %v633_v44  ;;  %v648_v60 = vshll.u32 %v1039_v59, %v633_v44  ;;  %vm651_vm4 = vcmp.lt.s32.totalorder %v632_v43, 1  ;;  %vm652_vm5 = vcmp.lt.s32.totalorder %v632_v43, 2 }
 0x105   :  { %v637_v61 = vshrl.u32 %v1036_v53, %v634_v48  ;;  %v640_v62 = vshrl.u32 %v1037_v55, %v634_v48  ;;  %v643_v63 = vshrl.u32 %v1038_v57, %v634_v48  ;;  %v635_v0 = vshrl.u32 %v1035_v49, %v634_v48 }
 0x106   :  { %v646_v1 = vshrl.u32 %v1039_v59, %v634_v48  ;;  %v649_v3 = vshrl.u32 %v1040_v2, %v634_v48  ;;  %v531_v7 = vsub.s32 32, %v530_v52  ;;  %vm653_vm6 = vcmp.lt.s32.totalorder %v632_v43, 3 }
 0x107   :  { %v638_v4 = vor.u32 %v637_v61, %v636_v50  ;;  %v641_v5 = vor.u32 %v640_v62, %v639_v54  ;;  %v644_v6 = vor.u32 %v643_v63, %v642_v56  ;;  %vm654_vm7 = vcmp.lt.s32.totalorder %v632_v43, 4 }
 0x108   :  { %v647_v8 = vor.u32 %v646_v1, %v645_v58  ;;  %v650_v9 = vor.u32 %v649_v3, %v648_v60  ;;  %v533_v17 = vshll.u32 %v1035_v49, %v530_v52  ;;  %v534_v20 = vshrl.u32 %v1036_v53, %v531_v7 }
 0x109   :  { %v655_v10 = vsel %vm651_vm4, %v635_v0, %v638_v4  ;;  %v656_v11 = vsel %vm654_vm7, %v644_v6, 2102212464  ;;  %v659_v12 = vsel %vm651_vm4, %v638_v4, %v641_v5  ;;  %v663_v13 = vsel %vm651_vm4, %v641_v5, %v644_v6 }
 0x10a   :  { %v657_v14 = vsel %vm653_vm6, %v641_v5, %v656_v11  ;;  %v660_v15 = vsel %vm654_vm7, %v647_v8, 920167782  ;;  %v664_v16 = vsel %vm654_vm7, %v650_v9, 1326507024  ;;  %v536_v21 = vshll.u32 %v1036_v53, %v530_v52 }
 0x10b   :  { %v661_v18 = vsel %vm653_vm6, %v644_v6, %v660_v15  ;;  %v665_v19 = vsel %vm653_vm6, %v647_v8, %v664_v16  ;;  %v658_v22 = vsel %vm652_vm5, %v655_v10, %v657_v14  ;;  %v537_v25 = vshrl.u32 %v1037_v55, %v531_v7 }
 0x10c   :  { %v662_v23 = vsel %vm652_vm5, %v659_v12, %v661_v18  ;;  %v666_v24 = vsel %vm652_vm5, %v663_v13, %v665_v19  ;;  %v535_v33 = vor.u32 %v534_v20, %v533_v17  ;;  %v539_v36 = vshll.u32 %v1037_v55, %v530_v52 }
 0x10d   :  { %v1091_v26 = vmul.u32.u64.low %v1079_v46, %v666_v24  ;;  %v1092_v30 = vmul.u32.u64.high %v1079_v46, %v666_v24, %v1091_v26  ;;  %v1095_v31 = vmul.u32.u64.low %v1079_v46, %v662_v23  ;;  %v1096_v32 = vmul.u32.u64.high %v1079_v46, %v662_v23, %v1095_v31 }
 0x10e   :  { %v538_v35 = vor.u32 %v537_v25, %v536_v21  ;;  %v540_v37 = vshrl.u32 %v1038_v57, %v531_v7  ;;  %v542_v38 = vshll.u32 %v1038_v57, %v530_v52  ;;  %v543_v39 = vshrl.u32 %v1039_v59, %v531_v7 }
 0x10f   :  { %v546_v40 = vshrl.u32 %v1040_v2, %v531_v7  ;;  %v674_v42 = vmul.u32 %v1079_v46, %v658_v22  ;;  %v532_v43 = vshrl.u32 %v1035_v49, %v531_v7  ;;  %v545_v45 = vshll.u32 %v1039_v59, %v530_v52 }
 0x110   :  { %v541_v44 = vor.u32 %v540_v37, %v539_v36  ;;  %vm676_vm8 = vc.u32 %v1092_v30, %v1095_v31  ;;  %v677_v48 = vadd.s32 1, %v1096_v32  ;;  %v544_v50 = vor.u32 %v543_v39, %v542_v38 }
 0x111   :  { %vm548_vm9 = vcmp.lt.s32.totalorder %v1082_v51, 1  ;;  %v547_v53 = vor.u32 %v546_v40, %v545_v45  ;;  %vm550_vm10 = vcmp.lt.s32.totalorder %v1082_v51, 3  ;;  %vm551_vm11 = vcmp.lt.s32.totalorder %v1082_v51, 4 }
 0x112   :  { %v556_v54 = vsel %vm548_vm9, %v535_v33, %v538_v35  ;;  %v678_v47 = vsel %vm676_vm8, %v677_v48, %v1096_v32  ;;  %v553_v55 = vsel %vm551_vm11, %v541_v44, 2102212464  ;;  %v557_v46 = vsel %vm551_vm11, %v544_v50, 920167782 }
 0x113   :  { %v560_v49 = vsel %vm548_vm9, %v538_v35, %v541_v44  ;;  %v679_v56 = vadd.s32 %v678_v47, %v674_v42  ;;  %vm549_vm12 = vcmp.lt.s32.totalorder %v1082_v51, 2  ;;  %v558_v52 = vsel %vm550_vm10, %v541_v44, %v557_v46 }
 0x114   :  { %v561_v57 = vsel %vm551_vm11, %v547_v53, 1326507024  ;;  %v552_v58 = vsel %vm548_vm9, %v532_v43, %v535_v33  ;;  %v554_v59 = vsel %vm550_vm10, %v538_v35, %v553_v55  ;;  %v559_v60 = vsel %vm549_vm12, %v556_v54, %v558_v52 }
 0x115   :  { %v562_v61 = vsel %vm550_vm10, %v544_v50, %v561_v57  ;;  %v680_v62 = vadd.s32 536870912, %v679_v56  ;;  %v1106_v0 = vmul.u32.u64.low %v564_v41, %v559_v60  ;;  %v1107_v1 = vmul.u32.u64.high %v564_v41, %v559_v60, %v1106_v0 }
 0x116   :  { %v563_v63 = vsel %vm549_vm12, %v560_v49, %v562_v61  ;;  %v555_v5 = vsel %vm549_vm12, %v552_v58, %v554_v59  ;;  %v675_v21 = vadd.s32 %v1095_v31, %v1092_v30  ;;  %vm930_vm4 = vcmask 64512  }
 0x117   :  { %v1109_v2 = vmul.u32.u64.low %v564_v41, %v563_v63  ;;  %v1110_v3 = vmul.u32.u64.high %v564_v41, %v563_v63, %v1109_v2  ;;  %v681_v4 = vshrl.u32 %v680_v62, 30  ;;  %v574_v7 = vadd.s32 1, %v1107_v1 }
 0x118   :  { %v571_v51 = vmul.u32 %v564_v41, %v555_v5  ;;  %vm711_vm11 = vweird.f32 %v1065_v27 }
 0x119   :  { %v682_v6 = vshll.u32 %v681_v4, 30  ;;  %vm573_vm13 = vc.u32 %v1110_v3, %v1106_v0  ;;  %v572_v42 = vadd.s32 %v1106_v0, %v1110_v3  ;;  %v705_v31 = vsub.s32 4, %v681_v4 }
 0x11a   :  { %v575_v9 = vsel %vm573_vm13, %v574_v7, %v1107_v1 }
 0x11b   :  { %v683_v8 = vsub.s32 %v679_v56, %v682_v6  ;;  %v576_v10 = vadd.s32 %v575_v9, %v571_v51  ;;  %v706_v46 = vsel %vm621_vm0, %v705_v31, %v681_v4 }
 0x11c   :  { %v708_v52 = vsel %vm620_vm1, 0, %v706_v46 }
 0x11d   :  { %v685_v11 = vsub.s32 0, %v683_v8  ;;  %v577_v12 = vadd.s32 536870912, %v576_v10  ;;  %v919_v61 = vadd.s32 3, %v708_v52  ;;  %v712_v0 = vand.u32 3, %v708_v52 }
 0x11f   :  { %v944_v13 = vmin.u32 %v685_v11, %v683_v8  ;;  %v578_v14 = vshrl.u32 %v577_v12, 30  ;;  %v920_v1 = vand.u32 3, %v919_v61  ;;  %vm714_vm5 = vcmp.eq.s32.totalorder %v712_v0, 0 }
 0x120   :  { %vm717_vm6 = vcmp.eq.s32.totalorder %v712_v0, 2  ;;  %vm713_vm9 = vcmp.lt.s32.totalorder %v712_v0, 2 }
 0x121   :  { %v687_v15 = vclz %v944_v13  ;;  %v579_v16 = vshll.u32 %v578_v14, 30  ;;  %v602_v60 = vsub.s32 4, %v578_v14  ;;  %vm925_vm7 = vcmp.eq.s32.totalorder %v920_v1, 2 }
 0x122   :  { %vm922_vm8 = vcmp.eq.s32.totalorder %v920_v1, 0  ;;  %vm921_vm10 = vcmp.lt.s32.totalorder %v920_v1, 2 }
 0x123   :  { %v945_v17 = vadd.s32 4294967294, %v687_v15  ;;  %v580_v18 = vsub.s32 %v576_v10, %v579_v16  ;;  %v603_v63 = vsel %vm518_vm2, %v602_v60, %v578_v14 }
 0x124   :  { %v605_v4 = vsel %vm517_vm3, 0, %v603_v63 }
 0x125   :  { %vm946_vm14 = vcmp.lt.s32.totalorder %v945_v17, 0  ;;  %v582_v20 = vsub.s32 0, %v580_v18  ;;  %v609_v15 = vand.u32 3, %v605_v4 }
 0x126   :  { %v690_v19 = vsel %vm946_vm14, 0, %v945_v17 }
 0x127   :  { %v691_v22 = vsub.s32 32, %v690_v19  ;;  %v695_v23 = vsub.s32 4294967266, %v690_v19  ;;  %v940_v24 = vmin.u32 %v582_v20, %v580_v18  ;;  %v692_v25 = vshll.u32 %v683_v8, %v690_v19 }
 0x128   :  { %v815_v8 = vadd.s32 3, %v605_v4  ;;  %vm614_vm12 = vcmp.eq.s32.totalorder %v609_v15, 2  ;;  %vm611_vm14 = vcmp.eq.s32.totalorder %v609_v15, 0 }
 0x129   :  { %v693_v26 = vshrl.u32 %v675_v21, %v691_v22  ;;  %v696_v32 = vadd.s32 127, %v695_v23  ;;  %v584_v33 = vclz %v940_v24 }
 0x12a   :  { %v816_v16 = vand.u32 3, %v815_v8 }
 0x12b   :  { %v694_v35 = vor.u32 %v693_v26, %v692_v25  ;;  %v697_v36 = vshll.u32 %v696_v32, 23  ;;  %v941_v37 = vadd.s32 4294967294, %v584_v33 }
 0x12c   :  { %vm821_vm13 = vcmp.eq.s32.totalorder %v816_v16, 2 }
 0x12d   :  { %v698_v38 = vor.u32 4788187, %v697_v36  ;;  %vm942_vm15 = vcmp.lt.s32.totalorder %v941_v37, 0  ;;  %v701_v40 = vcvt.s32.f32 %v694_v35 }
 0x12e   :  { %v587_v41 = vsel %vm942_vm15, 0, %v941_v37  ;;  %vm818_vm15 = vcmp.eq.s32.totalorder %v816_v16, 0 }
 0x12f   :  { %v699_v39 = vand.u32 2147483647, %v698_v38  ;;  %v588_v43 = vsub.s32 32, %v587_v41  ;;  %v592_v44 = vsub.s32 4294967266, %v587_v41  ;;  %v589_v45 = vshll.u32 %v580_v18, %v587_v41 }
 0x131   :  { %v702_v30 = vmul.f32 %v701_v40, %v699_v39  ;;  %v590_v48 = vshrl.u32 %v572_v42, %v588_v43  ;;  %v593_v50 = vadd.s32 127, %v592_v44 }
 0x133   :  { %v703_v53 = vxor.u32 2147483648, %v702_v30  ;;  %v591_v54 = vor.u32 %v590_v48, %v589_v45  ;;  %v594_v47 = vshll.u32 %v593_v50, 23 }
 0x135   :  { %v704_v55 = vsel %vm621_vm0, %v703_v53, %v702_v30  ;;  %v595_v56 = vor.u32 4788187, %v594_v47  ;;  %v598_v58 = vcvt.s32.f32 %v591_v54  ;;  %vm610_vm0 = vcmp.lt.s32.totalorder %v609_v15, 2 }
 0x136   :  { %v707_v49 = vsel %vm620_vm1, %v1065_v27, %v704_v55  ;;  %vm817_vm1 = vcmp.lt.s32.totalorder %v816_v16, 2 }
 0x137   :  { %1027 = vcosq.f32 %v707_v49  ;;  %v596_v57 = vand.u32 2147483647, %v595_v56 }
 0x138   :  { %1029 = vsinq.f32 %v707_v49 }
 0x139   :  { %v599_v59 = vmul.f32 %v598_v58, %v596_v57 }
 0x13b   :  { %v600_v62 = vxor.u32 2147483648, %v599_v59 }
 0x13d   :  { %v601_v29 = vsel %vm518_vm2, %v600_v62, %v599_v59  ;;  %vm608_vm2 = vweird.f32 %v1067_v28 }
 0x13e   :  { %v604_v2 = vsel %vm517_vm3, %v1067_v28, %v601_v29 }
 0x13f   :  { %1031 = vcosq.f32 %v604_v2 }
 0x140   :  { %1033 = vsinq.f32 %v604_v2 }
 0x141   :  { %v1028_v3 = vpop.eup %1027 }
 0x142   :  { %v1030_v5 = vpop.eup %1029  ;;  %v718_v6 = vxor.u32 2147483648, %v1028_v3 }
 0x143   :  { %v715_v7 = vxor.u32 2147483648, %v1030_v5 }
 0x144   :  { %v719_v51 = vsel %vm717_vm6, %v718_v6, %v1030_v5  ;;  %v927_v34 = vsel %vm925_vm7, %v718_v6, %v1030_v5 }
 0x145   :  { %v716_v9 = vsel %vm714_vm5, %v1028_v3, %v715_v7  ;;  %v924_v10 = vsel %vm922_vm8, %v1028_v3, %v715_v7 }
 0x146   :  { %v720_v11 = vsel %vm713_vm9, %v716_v9, %v719_v51  ;;  %v928_v12 = vsel %vm921_vm10, %v924_v10, %v927_v34 }
 0x147   :  { %v721_v13 = vsel %vm711_vm11, nan, %v720_v11  ;;  %v929_v14 = vsel %vm711_vm11, nan, %v928_v12 }
 0x148   :  { %932 = vst.msk [vmem:[%s1145_s2 + $0x8] sm:$0xff] %vm930_vm4, %v721_v13  ;;  %934 = vst.msk [vmem:[%s1145_s2 + $0x18] sm:$0xff] %vm930_vm4, %v929_v14 }
 0x149   :  { %v1032_v17 = vpop.eup %1031 }
 0x14a   :  { %v1034_v18 = vpop.eup %1033  ;;  %v615_v19 = vxor.u32 2147483648, %v1032_v17 }
 0x14b   :  { %v612_v27 = vxor.u32 2147483648, %v1034_v18 }
 0x14c   :  { %v616_v20 = vsel %vm614_vm12, %v615_v19, %v1034_v18  ;;  %v823_v21 = vsel %vm821_vm13, %v615_v19, %v1034_v18 }
 0x14d   :  { %v613_v22 = vsel %vm611_vm14, %v1032_v17, %v612_v27  ;;  %v820_v23 = vsel %vm818_vm15, %v1032_v17, %v612_v27 }
 0x14e   :  { %v617_v24 = vsel %vm610_vm0, %v613_v22, %v616_v20  ;;  %v824_v25 = vsel %vm817_vm1, %v820_v23, %v823_v21 }
 0x14f   :  { %v618_v26 = vsel %vm608_vm2, nan, %v617_v24  ;;  %v825_v32 = vsel %vm608_vm2, nan, %v824_v25 }
 0x150   :  { %931 = vst.msk [vmem:[%s1145_s2] sm:$0xff] %vm930_vm4, %v618_v26  ;;  %933 = vst.msk [vmem:[%s1145_s2 + $0x10] sm:$0xff] %vm930_vm4, %v825_v32 }

</bundles_post_ra>
